<compile_context>
chip_gen: v6e
topology: v6e:2x2x1
jax: 0.10.0
libtpu: 0.0.40
codegen_flags: <defaults>
</compile_context>

<pallas_src>
import math

import jax
import jax.numpy as jnp
from jax.experimental import pallas as pl
from jax.experimental.pallas import tpu as pltpu


# ---------------------------------------------------------------------------
# Kernel
# ---------------------------------------------------------------------------
def _normalize_kernel(x_ref, mean_ref, inv_ref, o_ref):
    # x_ref / o_ref: (TR, TL); mean_ref / inv_ref: (TR, 1) f32, broadcast over
    # lanes.  Compute in f32, cast once at the store.
    x = x_ref[...].astype(jnp.float32)
    o_ref[...] = ((x - mean_ref[...]) * inv_ref[...]).astype(o_ref.dtype)


def _pick_tile(dim: int, max_tile: int) -> int:
    # Full-extent blocks are always legal; otherwise max_tile is already a
    # multiple of the required alignment (8 sublanes / 128 lanes).
    return dim if dim <= max_tile else max_tile


# ---------------------------------------------------------------------------
# Core pallas_call on pre-flattened data
# ---------------------------------------------------------------------------
def _normalize_2d(x2: jax.Array, mean_rows: jax.Array, inv_rows: jax.Array,
                  donate_x: bool = False) -> jax.Array:
    rows, cols = x2.shape

    tr = _pick_tile(rows, 512)     # sublane tile (multiple of 8 or full extent)
    tl = _pick_tile(cols, 4096)    # lane tile (multiple of 128 or full extent)
    grid = (pl.cdiv(rows, tr), pl.cdiv(cols, tl))

    itemsize = jnp.dtype(x2.dtype).itemsize
    cost = pl.CostEstimate(
        flops=2 * rows * cols,
        bytes_accessed=2 * rows * cols * itemsize + 2 * rows * 4,
        transcendentals=0,
    )

    return pl.pallas_call(
        _normalize_kernel,
        out_shape=jax.ShapeDtypeStruct((rows, cols), x2.dtype),
        grid=grid,
        in_specs=[
            pl.BlockSpec((tr, tl), lambda i, j: (i, j)),   # x tile
            pl.BlockSpec((tr, 1), lambda i, j: (i, 0)),    # mean column (f32)
            pl.BlockSpec((tr, 1), lambda i, j: (i, 0)),    # 1/sd column (f32)
        ],
        out_specs=pl.BlockSpec((tr, tl), lambda i, j: (i, j)),
        compiler_params=pltpu.CompilerParams(
            dimension_semantics=("parallel", "parallel"),
            vmem_limit_bytes=48 << 20),
        cost_estimate=cost,
        input_output_aliases=({0: 0} if donate_x else {}),
    )(x2, mean_rows, inv_rows)


def _prepare_stats(mean, sd, c: int):
    """Per-channel f32 mean and 1/sd of length c (broadcasts length-1 stats)."""
    mean32 = jnp.broadcast_to(jnp.asarray(mean, jnp.float32), (c,))
    inv32 = jnp.broadcast_to(1.0 / jnp.asarray(sd, jnp.float32), (c,))
    return mean32, inv32


def _stats_to_columns(mean32, inv32, lead: int):
    rows = lead * mean32.shape[0]
    mean_rows = jnp.tile(mean32, (lead,)).reshape(rows, 1)
    inv_rows = jnp.tile(inv32, (lead,)).reshape(rows, 1)
    return mean_rows, inv_rows


def _jnp_fallback(x, mean32, inv32, c: int):
    shape = [1] * x.ndim
    shape[-3] = c
    y = (x.astype(jnp.float32) - mean32.reshape(shape)) * inv32.reshape(shape)
    return y.astype(x.dtype)


# ---------------------------------------------------------------------------
# Functional API (matches torch `normalize`)
# ---------------------------------------------------------------------------
def normalize_pallas(x: jax.Array, mean=None, sd=None,
                     donate_x: bool = False) -> jax.Array:
    """(x - mean[c]) / sd[c] with the channel axis at dim -3 (NCHW for 4-D)."""
    # Identity fast path: default stats are mean=0, sd=1 -> skip the HBM pass.
    if mean is None and sd is None:
        return x
    if mean is None:
        mean = jnp.array([0.0], dtype=jnp.float32)
    if sd is None:
        sd = jnp.array([1.0], dtype=jnp.float32)

    assert x.ndim >= 3, "channel axis expected at dim -3"
    c = x.shape[-3]
    lead = int(math.prod(x.shape[:-3])) if x.ndim > 3 else 1
    cols = int(math.prod(x.shape[-2:]))

    mean32, inv32 = _prepare_stats(mean, sd, c)

    # Tiny feature maps (< 128 lanes) would force masked partial stores;
    # plain jnp is faster there.
    if cols < 128:
        return _jnp_fallback(x, mean32, inv32, c)

    mean_rows, inv_rows = _stats_to_columns(mean32, inv32, lead)
    x2 = x.reshape(lead * c, cols)  # zero-copy for contiguous NCHW
    out2 = _normalize_2d(x2, mean_rows, inv_rows, donate_x=donate_x)
    return out2.reshape(x.shape)


# ---------------------------------------------------------------------------
# Module (matches torch `Normalization`, frozen params)
# ---------------------------------------------------------------------------
class Normalization:
    """JAX/Pallas port of the PyTorch Normalization module (frozen params)."""

    def __init__(self, mean: list[float] | None = None,
                 sd: list[float] | None = None):
        self.mean = None if mean is None else jnp.array(mean, dtype=jnp.float32)
        self.sd = None if sd is None else jnp.array(sd, dtype=jnp.float32)
        # 1/sd computed once; per-(lead) column cache avoids re-dispatching the
        # tiny stat-prep ops on every call.
        self._col_cache: dict[tuple[int, int], tuple[jax.Array, jax.Array]] = {}

    def __call__(self, x: jax.Array) -> jax.Array:
        if self.mean is None and self.sd is None:
            return x  # identity fast path
        mean = self.mean if self.mean is not None else jnp.array([0.0], jnp.float32)
        sd = self.sd if self.sd is not None else jnp.array([1.0], jnp.float32)

        assert x.ndim >= 3, "channel axis expected at dim -3"
        c = x.shape[-3]
        lead = int(math.prod(x.shape[:-3])) if x.ndim > 3 else 1
        cols = int(math.prod(x.shape[-2:]))

        mean32, inv32 = _prepare_stats(mean, sd, c)
        if cols < 128:
            return _jnp_fallback(x, mean32, inv32, c)

        key = (lead, c)
        if key not in self._col_cache:
            self._col_cache[key] = _stats_to_columns(mean32, inv32, lead)
        mean_rows, inv_rows = self._col_cache[key]

        x2 = x.reshape(lead * c, cols)
        return _normalize_2d(x2, mean_rows, inv_rows).reshape(x.shape)


# ---------------------------------------------------------------------------
# Self-test
# ---------------------------------------------------------------------------
if __name__ == "__main__":
    key = jax.random.PRNGKey(0)
    N, C, H, W = 2, 4, 16, 16
    x = jax.random.normal(key, (N, C, H, W), dtype=jnp.float32)

    # Deterministic "dataset statistics" for the 4 channels.
    mean = [0.485, 0.456, 0.406, 0.5]
    sd = [0.229, 0.224, 0.225, 0.25]

    module = Normalization(mean=mean, sd=sd)
    out = jax.block_until_ready(module(x))

    # Reference in plain JAX (same semantics as the PyTorch module).
    mean_a = jnp.array(mean, jnp.float32).reshape(1, C, 1, 1)
    sd_a = jnp.array(sd, jnp.float32).reshape(1, C, 1, 1)
    ref = (x - mean_a) / sd_a
    assert out.shape == (N, C, H, W)
    # reciprocal-multiply vs divide differs by ~1 ulp; tight-but-safe tol
    assert jnp.allclose(out, ref, atol=1e-5, rtol=1e-5)

    # Second call hits the cached stat columns; result must match.
    out2 = jax.block_until_ready(module(x))
    assert jnp.allclose(out2, ref, atol=1e-5, rtol=1e-5)

    # Identity fast path (mean=None, sd=None).
    out_id = jax.block_until_ready(normalize_pallas(x))
    assert jnp.allclose(out_id, x, atol=0.0, rtol=0.0)

    # Small-feature-map fallback path (H*W < 128 lanes).
    x_small = jax.random.normal(key, (N, C, 7, 7), dtype=jnp.float32)
    out_small = jax.block_until_ready(module(x_small))
    ref_small = (x_small - mean_a) / sd_a
    assert jnp.allclose(out_small, ref_small, atol=1e-5, rtol=1e-5)

    # bf16 input: stats stay f32 inside the kernel, cast only at the store.
    x_bf16 = x.astype(jnp.bfloat16)
    out_bf16 = jax.block_until_ready(normalize_pallas(x_bf16, mean, sd))
    ref_bf16 = ((x_bf16.astype(jnp.float32) - mean_a) / sd_a).astype(jnp.bfloat16)
    assert jnp.allclose(out_bf16.astype(jnp.float32),
                        ref_bf16.astype(jnp.float32), atol=2e-2, rtol=2e-2)

    print("KERNEL_OK")
</pallas_src>

<mosaic_0001>
module attributes {stable_mosaic.version = 11 : i64} {
  func.func @_normalize_kernel(%arg0: i32, %arg1: i32, %arg2: memref<8x256xf32, #tpu.memory_space<vmem>>, %arg3: memref<8x1xf32, #tpu.memory_space<vmem>>, %arg4: memref<8x1xf32, #tpu.memory_space<vmem>>, %arg5: memref<8x256xf32, #tpu.memory_space<vmem>>) attributes {dimension_semantics = [#tpu.dimension_semantics<parallel>, #tpu.dimension_semantics<parallel>], iteration_bounds = array<i64: 1, 1>, scalar_prefetch = 0 : i64, scratch_operands = 0 : i64, tpu.core_type = #tpu.core_type<tc>, window_params = [{transform_indices = @transform_0, window_bounds = array<i64: 8, 256>}, {transform_indices = @transform_1, window_bounds = array<i64: 8, 1>}, {transform_indices = @transform_2, window_bounds = array<i64: 8, 1>}, {transform_indices = @transform_3, window_bounds = array<i64: 8, 256>}]} {
    %c0 = arith.constant 0 : index
    %c0_0 = arith.constant 0 : index
    %0 = vector.load %arg2[%c0, %c0_0] : memref<8x256xf32, #tpu.memory_space<vmem>>, vector<8x256xf32>
    %c0_1 = arith.constant 0 : index
    %c0_2 = arith.constant 0 : index
    %1 = vector.load %arg3[%c0_1, %c0_2] : memref<8x1xf32, #tpu.memory_space<vmem>>, vector<8x1xf32>
    %2 = vector.broadcast %1 : vector<8x1xf32> to vector<8x256xf32>
    %3 = arith.subf %0, %2 : vector<8x256xf32>
    %c0_3 = arith.constant 0 : index
    %c0_4 = arith.constant 0 : index
    %4 = vector.load %arg4[%c0_3, %c0_4] : memref<8x1xf32, #tpu.memory_space<vmem>>, vector<8x1xf32>
    %5 = vector.broadcast %4 : vector<8x1xf32> to vector<8x256xf32>
    %6 = arith.mulf %3, %5 : vector<8x256xf32>
    %c0_5 = arith.constant 0 : index
    %c0_6 = arith.constant 0 : index
    %7 = vector.load %arg5[%c0_5, %c0_6] : memref<8x256xf32, #tpu.memory_space<vmem>>, vector<8x256xf32>
    tpu.vector_store %arg5[%c0_5, %c0_6], %6 {strides = array<i32>} : memref<8x256xf32, #tpu.memory_space<vmem>>, vector<8x256xf32>,
    return
  }
  func.func @transform_0(%arg0: i32, %arg1: i32) -> (i32, i32) {
    %c0_i32 = arith.constant 0 : i32
    return %arg0, %arg1 : i32, i32
  }
  func.func @transform_1(%arg0: i32, %arg1: i32) -> (i32, i32) {
    %c0_i32 = arith.constant 0 : i32
    %c0_i32_0 = arith.constant 0 : i32
    return %arg0, %c0_i32 : i32, i32
  }
  func.func @transform_2(%arg0: i32, %arg1: i32) -> (i32, i32) {
    %c0_i32 = arith.constant 0 : i32
    %c0_i32_0 = arith.constant 0 : i32
    return %arg0, %c0_i32 : i32, i32
  }
  func.func @transform_3(%arg0: i32, %arg1: i32) -> (i32, i32) {
    %c0_i32 = arith.constant 0 : i32
    return %arg0, %arg1 : i32, i32
  }
}

</mosaic_0001>

<bundles_post_ra>
// kernel: tpu_custom_call.1
= control target key start
LH: loop header
LB: loop body
LE: loop exit
PB: predicated region body
PF: predicated region fallthrough
CT: control target
= control target key end

     0   :  { %v74_v1 = vmov 0   ;;  %s111_s0 = inlined_call_operand.vmem [shape: f32[8,256], index: 0, kind: input, shape index: {}]   ;;  %s112_s1 = inlined_call_operand.vmem [shape: f32[8,1], index: 1, kind: input, shape index: {}]   ;;  %s113_s2 = inlined_call_operand.vmem [shape: f32[8,1], index: 2, kind: input, shape index: {}]   ;;  %s114_s3 = inlined_call_operand.hbm [shape: f32[8,256], index: 3, kind: output, shape index: {}]  }
   0x1   :  { %v17_v0 = vld [vmem:[%s112_s1] sm:$0xff]  ;;  %51 = vset.pattern.permute.xlu0 %v74_v1 }
   0x2   :  { %8 = vsyncpa [#allocation3], 0  ;;  %20 = vperm.xlu0 %51, %v17_v0   ;;  %v25_v2 = vld [vmem:[%s113_s2] sm:$0xff]  ;;  %v16_v5 = vld [vmem:[%s111_s0 + $0x8] sm:$0xff]  ;;  %s75_s20 = smov [#allocation2]  }
   0x3   :  { %v15_v4 = vld [vmem:[%s111_s0] sm:$0xff]  ;;  %s41_s1 = sshll.u32 %s75_s20, 4  ;;  %s42_s1 = int_to_ptr.vmem [resolvable:$true] %s41_s1 }
   0x4   :  { %s52_s2 = scalar_lea.vmem %s42_s1, 256  ;;  %p57_p1 = scmp.lt.s32.totalorder %s42_s1, %s42_s1 }
   0x5   :  { %p53_p0 = scmp.ne.s32.totalorder %s42_s1, %s52_s2  ;;  %p58_p2 = scmp.lt.s32.totalorder %s52_s2, %s52_s2 }
   0x6   :  { %28 = vperm.xlu0 %51, %v25_v2  }
   0x7   :  { %p59_p3 = por %p58_p2, %p57_p1 }
   0x9   :  { %p60_p4 = pnand %p59_p3, %p53_p0 }
  0x7d   :  { %v21_v3 = vpop.permute.xlu0 %20 }
  0x7e   :  { %v23_v6 = vsub.f32 %v15_v4, %v21_v3  ;;  %v24_v7 = vsub.f32 %v16_v5, %v21_v3 }
  0x81   :  { %v29_v8 = vpop.permute.xlu0 %28 }
  0x82   :  { %v31_v9 = vmul.f32 %v29_v8, %v23_v6  ;;  %v32_v10 = vmul.f32 %v29_v8, %v24_v7 }
  0x84   :  { %33 = vst [vmem:[#allocation2] sm:$0xff] %v31_v9  ;;  %34 = vst [vmem:[#allocation2 + $0x8] sm:$0xff] %v32_v10 }
  0x85   :  { %63 = shalt.err (!%p60_p4)
}
  0x86   :  { %44 = dma.vmem_to_hbm [thread:$0]  %s42_s1, 256, %s114_s3, [#allocation3]  }
  0x87   :  { %72 = dma.done.wait [#allocation3], 256  }
  0x88   :  { %73 = vsyncadd [#allocation3], 4294967040 }
  0x89   :  { %48 = vsyncpa [#allocation3], 1 }

</bundles_post_ra>
